<compile_context>
chip_gen: v7x
topology: tpu7x:2x2x1
jax: 0.10.0
libtpu: 0.0.40
codegen_flags: <defaults>
</compile_context>

<pallas_src>
import jax
import jax.numpy as jnp
from jax.experimental import pallas as pl
from jax.experimental.pallas import tpu as pltpu

# ------------------------- model hyper-parameters -------------------------
EMBEDDING_SIZE = 128            # ts_out1 / ts_out2 width
PRED_HIDDEN = 64                # head hidden width
NUM_OUT = 1
NUM_HEADS = 4                   # fused column order: 0=aux, 1=select, 2=normal, 3=stable
PERSON_OUT_DIM = 6

PARAM_ARGS = dict(len_time=9, test_num=4, lab_test_num=2, person_feature_dim=5, device=None)
NUM_FEATURE = PARAM_ARGS["test_num"]
PERSON_IN_DIM = PARAM_ARGS["person_feature_dim"]
IB_DIM = 2 * NUM_FEATURE                         # 8
RAW_IN = IB_DIM + 1 + PERSON_IN_DIM              # 14 = [ib | hgb | raw person]
ENC_IN = 16                                      # lane-pad the encoder K dim to 16
TWO_E = 2 * EMBEDDING_SIZE                       # 256 (== NUM_HEADS * PRED_HIDDEN)

MAX_TILE_ROWS = 2048                             # ~6 MB of f32/bf16 intermediates per tile


# ------------------------------- kernel -----------------------------------
def forecaster_kernel(x_ref,                        # (tile_rows, 16) bf16 fused input
                      w_enc_ref, b_enc_ref,         # (16,256) bf16 / (1,256) f32
                      w1_ref, b1_ref,               # (256,256) bf16 / (1,256) f32 block-diag heads
                      w2_ref, b2_ref,               # (256,4)  bf16 / (1,4)   f32
                      out_ref):                     # (tile_rows, 4) f32
    # fused stand-in encoder: lanes [0:128] = ts_out1, [128:256] = ts_out2
    # TODO(synk): LSTM_Attention_model (encoder_ts) is undefined in the source; this single-layer
    # tanh stand-in replaces it, so test_time_delta / nnan_mask never reach the kernel.
    pre = jnp.dot(x_ref[...], w_enc_ref[...],
                  preferred_element_type=jnp.float32) + b_enc_ref[...]
    h = jnp.tanh(pre)                                                   # f32 (rows, 256)

    # four heads fused into one block-diagonal (256,256) + (256,4) matmul pair (bf16 operands)
    z = jnp.dot(h.astype(jnp.bfloat16), w1_ref[...],
                preferred_element_type=jnp.float32) + b1_ref[...]
    z = jnp.maximum(z, 0.0)                       # per-head ReLU (columns disjoint per head)
    o = jnp.dot(z.astype(jnp.bfloat16), w2_ref[...],
                preferred_element_type=jnp.float32) + b2_ref[...]       # f32 (rows, 4)

    # per-head output activation on f32 logits: col 0 aux ReLU, col 1 select Sigmoid, 2/3 identity
    lane = jax.lax.broadcasted_iota(jnp.int32, o.shape, 1)
    o = jnp.where(lane == 0, jnp.maximum(o, 0.0), o)
    o = jnp.where(lane == 1, jax.nn.sigmoid(o), o)

    out_ref[...] = o


# ------------------------------ wrapper ------------------------------------
@jax.jit
def selective_forecaster_forward(fused, input_batch, hgb_delta, test_time_delta,
                                 person_info, nnan_mask):
    del test_time_delta, nnan_mask  # consumed only by the undefined encoder (see TODO above)
    B, T, _ = input_batch.shape
    rows = B * T

    # single fused, lane-padded encoder input (person_linear is folded into the weights offline)
    person_rep = jnp.broadcast_to(person_info.astype(jnp.float32)[:, None, :],
                                  (B, T, PERSON_IN_DIM))
    x = jnp.concatenate(
        [input_batch.astype(jnp.float32),
         hgb_delta.astype(jnp.float32),
         person_rep,
         jnp.zeros((B, T, ENC_IN - RAW_IN), jnp.float32)],
        axis=-1).astype(jnp.bfloat16).reshape(rows, ENC_IN)

    # tile the flat rows axis: multiple of 8 sublanes, aim for >= 2 grid steps (v7x megacore)
    tile_rows = min(MAX_TILE_ROWS, max(8, 8 * pl.cdiv(pl.cdiv(rows, 2), 8)))
    nb = pl.cdiv(rows, tile_rows)
    rows_pad = nb * tile_rows
    if rows_pad != rows:
        x = jnp.pad(x, ((0, rows_pad - rows), (0, 0)))

    flops = 2 * rows_pad * (ENC_IN * TWO_E + TWO_E * TWO_E + TWO_E * NUM_HEADS)
    trans = rows_pad * (TWO_E + NUM_HEADS)
    bytes_accessed = (2 * rows_pad * ENC_IN
                      + 2 * (ENC_IN * TWO_E + TWO_E * TWO_E + TWO_E * NUM_HEADS)
                      + 4 * (TWO_E + TWO_E + NUM_HEADS)
                      + 4 * rows_pad * NUM_HEADS)

    res = lambda i: (0, 0)   # weights / biases stay resident across the row grid

    out = pl.pallas_call(
        forecaster_kernel,
        out_shape=jax.ShapeDtypeStruct((rows_pad, NUM_HEADS), jnp.float32),
        grid_spec=pltpu.PrefetchScalarGridSpec(
            num_scalar_prefetch=0,
            grid=(nb,),
            in_specs=[
                pl.BlockSpec((tile_rows, ENC_IN), lambda i: (i, 0)),
                pl.BlockSpec((ENC_IN, TWO_E), res),
                pl.BlockSpec((1, TWO_E), res),
                pl.BlockSpec((TWO_E, TWO_E), res),
                pl.BlockSpec((1, TWO_E), res),
                pl.BlockSpec((TWO_E, NUM_HEADS), res),
                pl.BlockSpec((1, NUM_HEADS), res),
            ],
            out_specs=pl.BlockSpec((tile_rows, NUM_HEADS), lambda i: (i, 0)),
        ),
        compiler_params=pltpu.CompilerParams(dimension_semantics=("parallel",)),
        cost_estimate=pl.CostEstimate(flops=flops, transcendentals=trans,
                                      bytes_accessed=bytes_accessed),
    )(
        x,
        fused["w_enc"], fused["b_enc"],
        fused["w1_blk"], fused["b1_blk"],
        fused["w2_blk"], fused["b2_blk"],
    )

    out = out[:rows].reshape(B, T, NUM_HEADS)
    aux = out[..., 0:1]
    select = out[..., 1:2]
    normal = out[..., 2:3]
    stable = out[..., 3:4]
    # match torch return order: (aux_out, normal_out, stable_out, select_out)
    return aux, normal, stable, select


# ------------------------ deterministic parameters --------------------------
def init_params(key):
    ks = jax.random.split(key, 10)

    def lin(k, fan_in, shape):
        bound = 1.0 / jnp.sqrt(fan_in)
        return jax.random.uniform(k, shape, jnp.float32, -bound, bound)

    input_size = IB_DIM + 1 + PERSON_OUT_DIM   # 15 (ib | hgb | person_feature)
    return {
        "person_w": lin(ks[0], PERSON_IN_DIM, (PERSON_IN_DIM, PERSON_OUT_DIM)),
        "person_b": lin(ks[1], PERSON_IN_DIM, (PERSON_OUT_DIM,)),
        # stand-in encoder weights producing ts_out1 / ts_out2 from [ib | hgb | person_feature]
        "enc_w1": lin(ks[2], input_size, (input_size, EMBEDDING_SIZE)),
        "enc_b1": lin(ks[3], input_size, (EMBEDDING_SIZE,)),
        "enc_w2": lin(ks[4], input_size, (input_size, EMBEDDING_SIZE)),
        "enc_b2": lin(ks[5], input_size, (EMBEDDING_SIZE,)),
        # four heads stacked: [aux, select, normal, stable]
        "head_w1": lin(ks[6], EMBEDDING_SIZE, (NUM_HEADS, EMBEDDING_SIZE, PRED_HIDDEN)),
        "head_b1": lin(ks[7], EMBEDDING_SIZE, (NUM_HEADS, PRED_HIDDEN)),
        "head_w2": lin(ks[8], PRED_HIDDEN, (NUM_HEADS, PRED_HIDDEN, NUM_OUT)),
        "head_b2": lin(ks[9], PRED_HIDDEN, (NUM_HEADS, NUM_OUT)),
    }


def fuse_params(p):
    """Build the MXU-friendly fused weight layout once, offline (bf16 weights, f32 biases)."""
    E, H = EMBEDDING_SIZE, PRED_HIDDEN

    # fused stand-in encoder: lanes [0:E] = ts_out1, [E:2E] = ts_out2
    w_enc_full = jnp.concatenate([p["enc_w1"], p["enc_w2"]], axis=1)        # (15, 256)
    b_enc = jnp.concatenate([p["enc_b1"], p["enc_b2"]])[None, :]            # (1, 256)
    w_ib = w_enc_full[:IB_DIM]                                              # (8, 256)
    w_hd = w_enc_full[IB_DIM:IB_DIM + 1]                                    # (1, 256)
    w_pf = w_enc_full[IB_DIM + 1:]                                          # (6, 256)

    # fold person_linear (affine, exact) into the encoder: raw person_info feeds the kernel
    w_p2e = p["person_w"] @ w_pf                                            # (5, 256)
    b_enc = b_enc + p["person_b"][None, :] @ w_pf                           # (1, 256)

    w_enc = jnp.concatenate(
        [w_ib, w_hd, w_p2e, jnp.zeros((ENC_IN - RAW_IN, 2 * E), jnp.float32)], axis=0)  # (16, 256)

    # head columns: 0=aux, 1=select, 2=normal (all read ts2), 3=stable (reads ts1)
    w1_blk = jnp.zeros((2 * E, NUM_HEADS * H), jnp.float32)
    w1_blk = w1_blk.at[E:, 0 * H:1 * H].set(p["head_w1"][0])                # aux    <- ts2
    w1_blk = w1_blk.at[E:, 1 * H:2 * H].set(p["head_w1"][1])                # select <- ts2
    w1_blk = w1_blk.at[E:, 2 * H:3 * H].set(p["head_w1"][2])                # normal <- ts2
    w1_blk = w1_blk.at[:E, 3 * H:4 * H].set(p["head_w1"][3])                # stable <- ts1
    b1_blk = p["head_b1"].reshape(1, NUM_HEADS * H)                         # (1, 256)

    w2_blk = jnp.zeros((NUM_HEADS * H, NUM_HEADS), jnp.float32)
    for k in range(NUM_HEADS):
        w2_blk = w2_blk.at[k * H:(k + 1) * H, k].set(p["head_w2"][k, :, 0])
    b2_blk = p["head_b2"].reshape(1, NUM_HEADS)                             # (1, 4)

    return {
        "w_enc": w_enc.astype(jnp.bfloat16), "b_enc": b_enc,
        "w1_blk": w1_blk.astype(jnp.bfloat16), "b1_blk": b1_blk,
        "w2_blk": w2_blk.astype(jnp.bfloat16), "b2_blk": b2_blk,
    }


if __name__ == "__main__":
    key = jax.random.PRNGKey(0)
    kp, k1, k2, k3, k4, k5 = jax.random.split(key, 6)

    B = 2
    T = PARAM_ARGS["len_time"] - 1          # 8

    fused = fuse_params(init_params(kp))

    input_batch = jax.random.normal(k1, (B, T, IB_DIM), jnp.float32)
    hgb_delta = jax.random.normal(k2, (B, T, 1), jnp.float32)
    test_time_delta = jax.random.normal(k3, (B, T, 1), jnp.float32)
    person_info = jax.random.normal(k4, (B, PERSON_IN_DIM), jnp.float32)
    nnan_mask = (jax.random.uniform(k5, (B, T, NUM_FEATURE)) > 0.2).astype(jnp.float32)

    aux_out, normal_out, stable_out, select_out = jax.block_until_ready(
        selective_forecaster_forward(
            fused, input_batch, hgb_delta, test_time_delta, person_info, nnan_mask
        )
    )

    assert aux_out.shape == (B, T, 1)
    assert normal_out.shape == (B, T, 1)
    assert stable_out.shape == (B, T, 1)
    assert select_out.shape == (B, T, 1)
    assert bool(jnp.all(aux_out >= 0.0))                               # final ReLU
    assert bool(jnp.all((select_out > 0.0) & (select_out < 1.0)))      # final Sigmoid
    print("KERNEL_OK")
</pallas_src>

<mosaic_0001>
module attributes {stable_mosaic.version = 11 : i64} {
  func.func @forecaster_kernel(%arg0: i32, %arg1: memref<8x16xbf16, #tpu.memory_space<vmem>>, %arg2: memref<16x256xbf16, #tpu.memory_space<vmem>>, %arg3: memref<1x256xf32, #tpu.memory_space<vmem>>, %arg4: memref<256x256xbf16, #tpu.memory_space<vmem>>, %arg5: memref<1x256xf32, #tpu.memory_space<vmem>>, %arg6: memref<256x4xbf16, #tpu.memory_space<vmem>>, %arg7: memref<1x4xf32, #tpu.memory_space<vmem>>, %arg8: memref<8x4xf32, #tpu.memory_space<vmem>>) attributes {dimension_semantics = [#tpu.dimension_semantics<parallel>], iteration_bounds = array<i64: 2>, scalar_prefetch = 0 : i64, scratch_operands = 0 : i64, tpu.core_type = #tpu.core_type<tc>, window_params = [{transform_indices = @transform_0, window_bounds = array<i64: 8, 16>}, {pipeline_mode = #tpu.pipeline_mode<synchronous>, transform_indices = @transform_1, window_bounds = array<i64: 16, 256>}, {pipeline_mode = #tpu.pipeline_mode<synchronous>, transform_indices = @transform_2, window_bounds = array<i64: 1, 256>}, {pipeline_mode = #tpu.pipeline_mode<synchronous>, transform_indices = @transform_3, window_bounds = array<i64: 256, 256>}, {pipeline_mode = #tpu.pipeline_mode<synchronous>, transform_indices = @transform_4, window_bounds = array<i64: 1, 256>}, {pipeline_mode = #tpu.pipeline_mode<synchronous>, transform_indices = @transform_5, window_bounds = array<i64: 256, 4>}, {pipeline_mode = #tpu.pipeline_mode<synchronous>, transform_indices = @transform_6, window_bounds = array<i64: 1, 4>}, {transform_indices = @transform_7, window_bounds = array<i64: 8, 4>}]} {
    %c0 = arith.constant 0 : index
    %c0_0 = arith.constant 0 : index
    %0 = vector.load %arg1[%c0, %c0_0] : memref<8x16xbf16, #tpu.memory_space<vmem>>, vector<8x16xbf16>
    %c0_1 = arith.constant 0 : index
    %c0_2 = arith.constant 0 : index
    %1 = vector.load %arg2[%c0_1, %c0_2] : memref<16x256xbf16, #tpu.memory_space<vmem>>, vector<16x256xbf16>
    %cst = arith.constant dense<0.000000e+00> : vector<8x256xf32>
    %2 = tpu.matmul %0, %1, %cst {dimension_numbers = #tpu.dot_dimension_numbers<[1], [0], [0], [1], [0, 0, 1, 1], [], []>} : vector<8x16xbf16>, vector<16x256xbf16>, vector<8x256xf32> -> vector<8x256xf32>
    %c0_3 = arith.constant 0 : index
    %c0_4 = arith.constant 0 : index
    %3 = vector.load %arg3[%c0_3, %c0_4] : memref<1x256xf32, #tpu.memory_space<vmem>>, vector<1x256xf32>
    %4 = vector.broadcast %3 : vector<1x256xf32> to vector<8x256xf32>
    %5 = arith.addf %2, %4 : vector<8x256xf32>
    %6 = math.tanh %5 : vector<8x256xf32>
    %7 = arith.truncf %6 : vector<8x256xf32> to vector<8x256xbf16>
    %c0_5 = arith.constant 0 : index
    %c0_6 = arith.constant 0 : index
    %8 = vector.load %arg4[%c0_5, %c0_6] : memref<256x256xbf16, #tpu.memory_space<vmem>>, vector<256x256xbf16>
    %cst_7 = arith.constant dense<0.000000e+00> : vector<8x256xf32>
    %9 = tpu.matmul %7, %8, %cst_7 {dimension_numbers = #tpu.dot_dimension_numbers<[1], [0], [0], [1], [0, 0, 1, 1], [], []>} : vector<8x256xbf16>, vector<256x256xbf16>, vector<8x256xf32> -> vector<8x256xf32>
    %c0_8 = arith.constant 0 : index
    %c0_9 = arith.constant 0 : index
    %10 = vector.load %arg5[%c0_8, %c0_9] : memref<1x256xf32, #tpu.memory_space<vmem>>, vector<1x256xf32>
    %11 = vector.broadcast %10 : vector<1x256xf32> to vector<8x256xf32>
    %12 = arith.addf %9, %11 : vector<8x256xf32>
    %cst_10 = arith.constant 0.000000e+00 : f32
    %13 = vector.broadcast %cst_10 : f32 to vector<8x256xf32>
    %14 = arith.maximumf %12, %13 : vector<8x256xf32>
    %15 = arith.truncf %14 : vector<8x256xf32> to vector<8x256xbf16>
    %c0_11 = arith.constant 0 : index
    %c0_12 = arith.constant 0 : index
    %16 = vector.load %arg6[%c0_11, %c0_12] : memref<256x4xbf16, #tpu.memory_space<vmem>>, vector<256x4xbf16>
    %cst_13 = arith.constant dense<0.000000e+00> : vector<8x4xf32>
    %17 = tpu.matmul %15, %16, %cst_13 {dimension_numbers = #tpu.dot_dimension_numbers<[1], [0], [0], [1], [0, 0, 1, 1], [], []>} : vector<8x256xbf16>, vector<256x4xbf16>, vector<8x4xf32> -> vector<8x4xf32>
    %c0_14 = arith.constant 0 : index
    %c0_15 = arith.constant 0 : index
    %18 = vector.load %arg7[%c0_14, %c0_15] : memref<1x4xf32, #tpu.memory_space<vmem>>, vector<1x4xf32>
    %19 = vector.broadcast %18 : vector<1x4xf32> to vector<8x4xf32>
    %20 = arith.addf %17, %19 : vector<8x4xf32>
    %21 = tpu.iota {dimensions = array<i32: 1>} : vector<8x4xi32>
    %c0_i32 = arith.constant 0 : i32
    %22 = vector.broadcast %c0_i32 : i32 to vector<8x4xi32>
    %23 = arith.cmpi eq, %21, %22 : vector<8x4xi32>
    %cst_16 = arith.constant 0.000000e+00 : f32
    %24 = vector.broadcast %cst_16 : f32 to vector<8x4xf32>
    %25 = arith.maximumf %20, %24 : vector<8x4xf32>
    %26 = arith.select %23, %25, %20 : vector<8x4xi1>, vector<8x4xf32>
    %c1_i32 = arith.constant 1 : i32
    %27 = vector.broadcast %c1_i32 : i32 to vector<8x4xi32>
    %28 = arith.cmpi eq, %21, %27 : vector<8x4xi32>
    %29 = arith.negf %26 : vector<8x4xf32>
    %30 = math.exp %29 : vector<8x4xf32>
    %cst_17 = arith.constant 1.000000e+00 : f32
    %31 = vector.broadcast %cst_17 : f32 to vector<8x4xf32>
    %32 = arith.addf %31, %30 : vector<8x4xf32>
    %33 = arith.divf %31, %32 : vector<8x4xf32>
    %34 = arith.select %28, %33, %26 : vector<8x4xi1>, vector<8x4xf32>
    %c0_18 = arith.constant 0 : index
    %c0_19 = arith.constant 0 : index
    %35 = vector.load %arg8[%c0_18, %c0_19] : memref<8x4xf32, #tpu.memory_space<vmem>>, vector<8x4xf32>
    tpu.vector_store %arg8[%c0_18, %c0_19], %34 {strides = array<i32>} : memref<8x4xf32, #tpu.memory_space<vmem>>, vector<8x4xf32>,
    return
  }
  func.func @transform_0(%arg0: i32) -> (i32, i32) {
    %c0_i32 = arith.constant 0 : i32
    %c0_i32_0 = arith.constant 0 : i32
    return %arg0, %c0_i32 : i32, i32
  }
  func.func @transform_1(%arg0: i32) -> (i32, i32) {
    %c0_i32 = arith.constant 0 : i32
    %c0_i32_0 = arith.constant 0 : i32
    %c0_i32_1 = arith.constant 0 : i32
    return %c0_i32, %c0_i32_0 : i32, i32
  }
  func.func @transform_2(%arg0: i32) -> (i32, i32) {
    %c0_i32 = arith.constant 0 : i32
    %c0_i32_0 = arith.constant 0 : i32
    %c0_i32_1 = arith.constant 0 : i32
    return %c0_i32, %c0_i32_0 : i32, i32
  }
  func.func @transform_3(%arg0: i32) -> (i32, i32) {
    %c0_i32 = arith.constant 0 : i32
    %c0_i32_0 = arith.constant 0 : i32
    %c0_i32_1 = arith.constant 0 : i32
    return %c0_i32, %c0_i32_0 : i32, i32
  }
  func.func @transform_4(%arg0: i32) -> (i32, i32) {
    %c0_i32 = arith.constant 0 : i32
    %c0_i32_0 = arith.constant 0 : i32
    %c0_i32_1 = arith.constant 0 : i32
    return %c0_i32, %c0_i32_0 : i32, i32
  }
  func.func @transform_5(%arg0: i32) -> (i32, i32) {
    %c0_i32 = arith.constant 0 : i32
    %c0_i32_0 = arith.constant 0 : i32
    %c0_i32_1 = arith.constant 0 : i32
    return %c0_i32, %c0_i32_0 : i32, i32
  }
  func.func @transform_6(%arg0: i32) -> (i32, i32) {
    %c0_i32 = arith.constant 0 : i32
    %c0_i32_0 = arith.constant 0 : i32
    %c0_i32_1 = arith.constant 0 : i32
    return %c0_i32, %c0_i32_0 : i32, i32
  }
  func.func @transform_7(%arg0: i32) -> (i32, i32) {
    %c0_i32 = arith.constant 0 : i32
    %c0_i32_0 = arith.constant 0 : i32
    return %arg0, %c0_i32 : i32, i32
  }
}

</mosaic_0001>

<bundles_post_ra>
// kernel: selective_forecaster_forward.1
= control target key start
LH: loop header
LB: loop body
LE: loop exit
PB: predicated region body
PF: predicated region fallthrough
CT: control target
= control target key end

     0   :  { %12 = vsyncpa [#allocation3], 0  ;;  %s1135_s24 = smov 0   ;;  %s1258_s0 = inlined_call_operand.vmem [shape: bf16[16,16], index: 0, kind: input, shape index: {}]   ;;  %s1259_s1 = inlined_call_operand.vmem [shape: bf16[16,256], index: 1, kind: input, shape index: {}]   ;;  %s1260_s2 = inlined_call_operand.vmem [shape: f32[1,256], index: 2, kind: input, shape index: {}]   ;;  %s1261_s3 = inlined_call_operand.hbm [shape: bf16[256,256], index: 3, kind: input, shape index: {}]   ;;  %s1262_s4 = inlined_call_operand.vmem [shape: f32[1,256], index: 4, kind: input, shape index: {}]   ;;  %s1263_s5 = inlined_call_operand.vmem [shape: bf16[256,4], index: 5, kind: input, shape index: {}]   ;;  %s1264_s6 = inlined_call_operand.vmem [shape: f32[1,4], index: 6, kind: input, shape index: {}]   ;;  %s1265_s7 = inlined_call_operand.vmem [shape: f32[16,4], index: 7, kind: output, shape index: {}]  }
   0x1 LB: > { %s1141_s25 = sadd.s32 4294967295, %s1089_s24   ;;  %p870_p0 = scmp.ge.s32.totalorder %s1089_s24, 1  ;;  %s1089_s24 = sphi %s1135_s24, %s18_s24  }
   0x2   : > { %p201_p1 = scmp.lt.s32.totalorder %s1089_s24, 3  ;;  %s1091_s26 = smov [#allocation2]  }
   0x3   : > { %s219_s27 = sshll.u32 %s1091_s26, 4  ;;  %p1266_p3 = scmp.eq.s32.totalorder %s1141_s25, 0  ;;  %s220_s27 = int_to_ptr.vmem [resolvable:$true] %s219_s27 }
   0x4   : > { %p1145_p2 = pnand %p870_p0, %p201_p1  ;;  %s1051_s9 = scalar_lea.hbm %s1261_s3, 4096 }
   0x5   : > { %p1052_p6 = scmp.ne.s32.totalorder %s1261_s3, %s1051_s9  ;;  %p1058_p10 = scmp.lt.u32.totalorder %s1051_s9, %s1261_s3 }
   0x6   : > { %s1268_s28 = scalar_select %p1145_p2, 1, 0 }
   0x7   : > { %p958_p4 = pneg %p1145_p2 }
   0x9   : > { %p1154_p5 = pnand %p1266_p3, %p958_p4 }
   0xb   : > { %p1053_p7 = pneg %p1154_p5 }
   0xd   : > { %p1054_p8 = pnand %p1053_p7, %p1052_p6 }
   0xf   : > { %p1055_p9 = pneg %p1054_p8 }
  0x11   : > { %p1060_p11 = pnand %p1058_p10, %p1055_p9 }
  0x13   : > { %1063 = shalt.err (!%p1060_p11)
}
  0x14   : > { %s1064_s14 = scalar_lea.vmem %s220_s27, 4096  ;;  %p1072_p1 = scmp.lt.s32.totalorder %s220_s27, %s220_s27 }
  0x15   : > { %p1065_p12 = scmp.ne.s32.totalorder %s220_s27, %s1064_s14  ;;  %p1073_p4 = scmp.lt.s32.totalorder %s1064_s14, %s1064_s14 }
  0x17   : > { %p1067_p13 = pnand %p1065_p12, %p1053_p7  ;;  %p1074_p3 = por %p1073_p4, %p1072_p1 }
  0x19   : > { %p1068_p0 = pneg %p1067_p13 }
  0x1b   : > { %p1075_p2 = pnand %p1074_p3, %p1068_p0 }
  0x1d   : > { %1078 = shalt.err (!%p1075_p2)
}
  0x1e   : > { %s1092_s15 = smov 128   ;;  %s1093_s16 = smov 8  }
  0x1f   : > { %961 = dma.hbm_to_vmem [thread:$0]  (!%p1154_p5), %s1261_s3, 4096, %s220_s27, [#allocation3], %s1092_s15, %s1092_s15, %s1093_s16  }
  0x20   : > { %p1270_p6 = scmp.ne.s32.totalorder %s1268_s28, 0 }
  0x21   : > { %p1271_p8 = scmp.eq.s32.totalorder (!%p1270_p6), %s1141_s25, 0 }
  0x22   : > { %251 = sbr.rel (%p1270_p6) target bundleno = 745 (0x2e9), region = 48 }
  0x29   : > { %1084 = dma.done.wait (%p1271_p8), [#allocation3], 4096   ;;  %p1272_p7 = pmov %p1271_p8 }
  0x2a   : > { %p281_p2 = scmp.lt.s32.totalorder %s1141_s25, 1  ;;  %v1094_v0 = vmov 0   ;;  %v976_v1 = vld [vmem:[%s1259_s1 + $0x4] ss:$8 sps:$4 sm:$0xff]   ;;  %v978_v2 = vld [vmem:[%s1259_s1] ss:$8 sps:$4 sm:$0xff]   ;;  %v295_v48 = vlaneseq }
  0x2b   : > { %1086 = vsyncadd (%p1272_p7), [#allocation3], 4294963200  ;;  %351 = vmatprep.mubr.bf16.mxu0 %v1094_v0  ;;  %319 = vmatprep.subr.bf16.mxu0 %v976_v1  ;;  %v979_v4 = vld [vmem:[#allocation2 + $0x4] ss:$8 sps:$4 sm:$0xff]   ;;  %v981_v5 = vld [vmem:[#allocation2] ss:$8 sps:$4 sm:$0xff]  }
  0x2c   : > { %s1274_s25 = smov (!%p281_p2, %s1141_s25), 1  ;;  %320 = vmatpush1.bf16.msra.mxu0 %v978_v2  ;;  %vm315_vm0 = vcmask 130048   ;;  %v982_v6 = vld [vmem:[#allocation2 + $0x14] ss:$8 sps:$4 sm:$0xff]   ;;  %568 = vmatprep.subr.bf16.mxu1 %v979_v4  ;;  %v984_v7 = vld [vmem:[#allocation2 + $0x10] ss:$8 sps:$4 sm:$0xff]  }
  0x2d   : > { %s875_s19 = sshll.u32 %s1274_s25, 2  ;;  %569 = vmatpush1.bf16.msra.mxu1 %v981_v5  ;;  %v985_v8 = vld [vmem:[#allocation2 + $0x24] ss:$8 sps:$4 sm:$0xff]   ;;  %v987_v9 = vld [vmem:[#allocation2 + $0x20] ss:$8 sps:$4 sm:$0xff]   ;;  %v1031_v40 = vld [vmem:[%s1263_s5 + $0x50] sm:$0xff]  }
  0x2e   : > { %s284_s22 = scalar_lea.vmem %s1258_s0, %s875_s19  ;;  %570 = vmatprep.subr.bf16.mxu1 %v982_v6  ;;  %v988_v10 = vld [vmem:[#allocation2 + $0x34] ss:$8 sps:$4 sm:$0xff]   ;;  %v990_v11 = vld [vmem:[#allocation2 + $0x30] ss:$8 sps:$4 sm:$0xff]   ;;  %v991_v12 = vld [vmem:[#allocation2 + $0x44] ss:$8 sps:$4 sm:$0xff]  }
  0x2f   : > { %v290_v3 = vld [vmem:[%s284_s22] sm:$0xf]  ;;  %v994_v14 = vld [vmem:[#allocation2 + $0x54] ss:$8 sps:$4 sm:$0xff]   ;;  %v996_v15 = vld [vmem:[#allocation2 + $0x50] ss:$8 sps:$4 sm:$0xff]  }
  0x30   : > { %879 = vmatmul.mubr.msk.bf16.vlgmr.msra.gmra.mrb[0].mxu0 %vm315_vm0, %v290_v3  ;;  %v993_v13 = vld [vmem:[#allocation2 + $0x40] ss:$8 sps:$4 sm:$0xff]   ;;  %v997_v16 = vld [vmem:[#allocation2 + $0x64] ss:$8 sps:$4 sm:$0xff]   ;;  %v1000_v18 = vld [vmem:[#allocation2 + $0x74] ss:$8 sps:$4 sm:$0xff]  }
  0x31   : > { %571 = vmatpush1.bf16.msra.mxu1 %v984_v7  ;;  %v999_v17 = vld [vmem:[#allocation2 + $0x60] ss:$8 sps:$4 sm:$0xff]   ;;  %v1002_v19 = vld [vmem:[#allocation2 + $0x70] ss:$8 sps:$4 sm:$0xff]   ;;  %v1003_v20 = vld [vmem:[#allocation2 + $0x84] ss:$8 sps:$4 sm:$0xff]  }
  0x32   : > { %572 = vmatprep.subr.bf16.mxu1 %v985_v8  ;;  %v1005_v21 = vld [vmem:[#allocation2 + $0x80] ss:$8 sps:$4 sm:$0xff]   ;;  %v1006_v22 = vld [vmem:[#allocation2 + $0x94] ss:$8 sps:$4 sm:$0xff]   ;;  %v1008_v23 = vld [vmem:[#allocation2 + $0x90] ss:$8 sps:$4 sm:$0xff]  }
  0x33   : > { %v1009_v24 = vld [vmem:[#allocation2 + $0xa4] ss:$8 sps:$4 sm:$0xff]   ;;  %v1011_v25 = vld [vmem:[#allocation2 + $0xa0] ss:$8 sps:$4 sm:$0xff]   ;;  %v1012_v26 = vld [vmem:[#allocation2 + $0xb4] ss:$8 sps:$4 sm:$0xff]  }
  0x34   : > { %v1014_v27 = vld [vmem:[#allocation2 + $0xb0] ss:$8 sps:$4 sm:$0xff]   ;;  %v1015_v28 = vld [vmem:[#allocation2 + $0xc4] ss:$8 sps:$4 sm:$0xff]   ;;  %v1017_v29 = vld [vmem:[#allocation2 + $0xc0] ss:$8 sps:$4 sm:$0xff]  }
  0x35   : > { %573 = vmatpush1.bf16.msra.mxu1 %v987_v9  ;;  %v1018_v30 = vld [vmem:[#allocation2 + $0xd4] ss:$8 sps:$4 sm:$0xff]   ;;  %v1020_v31 = vld [vmem:[#allocation2 + $0xd0] ss:$8 sps:$4 sm:$0xff]   ;;  %v1021_v32 = vld [vmem:[#allocation2 + $0xe4] ss:$8 sps:$4 sm:$0xff]  }
  0x36   : > { %574 = vmatprep.subr.bf16.mxu1 %v988_v10  ;;  %v1023_v33 = vld [vmem:[#allocation2 + $0xe0] ss:$8 sps:$4 sm:$0xff]   ;;  %v1024_v34 = vld [vmem:[#allocation2 + $0xf4] ss:$8 sps:$4 sm:$0xff]   ;;  %v1026_v35 = vld [vmem:[#allocation2 + $0xf0] ss:$8 sps:$4 sm:$0xff]  }
  0x37   : > { %v1027_v36 = vld [vmem:[%s1263_s5 + $0x40] sm:$0xff]   ;;  %v1029_v38 = vld [vmem:[%s1263_s5 + $0x48] sm:$0xff]   ;;  %v1032_v41 = vld [vmem:[%s1263_s5 + $0x10] sm:$0xff]   ;;  %v296_v49 = vshrl.u32 %v295_v48, 7  ;;  %s876_s23 = sshll.u32 %s1274_s25, 3  ;;  %vm801_vm3 = vcmask 31744  }
  0x38   : > { %v1028_v37 = vld [vmem:[%s1263_s5] sm:$0xff]   ;;  %932 = vmatprep.subr.bf16.mxu0 %v1027_v36  ;;  %v1030_v39 = vld [vmem:[%s1263_s5 + $0x8] sm:$0xff]   ;;  %v1033_v42 = vld [vmem:[%s1263_s5 + $0x58] sm:$0xff]   ;;  %s288_s28 = scalar_lea.vmem %s1265_s7, %s876_s23 }
  0x39   : > { %575 = vmatpush1.bf16.msra.mxu1 %v990_v11  ;;  %933 = vmatpush3.bf16.msra.mxu0 %v1028_v37  ;;  %v1034_v43 = vld [vmem:[%s1263_s5 + $0x18] sm:$0xff]   ;;  %v1035_v44 = vld [vmem:[%s1263_s5 + $0x60] sm:$0xff]   ;;  %v1037_v46 = vld [vmem:[%s1263_s5 + $0x68] sm:$0xff]   ;;  %v297_v50 = vsub.s32 0, %v296_v49  ;;  %v301_v52 = vsub.s32 1, %v296_v49 }
  0x3a   : > { %576 = vmatprep.subr.bf16.mxu1 %v991_v12  ;;  %934 = vmatprep.subr.bf16.mxu0 %v1029_v38  ;;  %v1036_v45 = vld [vmem:[%s1263_s5 + $0x20] sm:$0xff]   ;;  %v1038_v47 = vld [vmem:[%s1263_s5 + $0x28] sm:$0xff]   ;;  %v1039_v1 = vld [vmem:[%s1263_s5 + $0x70] sm:$0xff]  }
  0x3b   : > { %v293_v51 = vld [vmem:[%s1260_s2] sm:$0x3]  ;;  %v1040_v2 = vld [vmem:[%s1263_s5 + $0x30] sm:$0xff]   ;;  %v1041_v3 = vld [vmem:[%s1263_s5 + $0x78] sm:$0xff]  }
  0x3c   : > { %v298_v53 = vrot.slane %v293_v51, %v297_v50  ;;  %v302_v54 = vrot.slane %v293_v51, %v301_v52  ;;  %v1042_v4 = vld [vmem:[%s1263_s5 + $0x38] sm:$0xff]   ;;  %v396_v5 = vld [vmem:[%s1262_s4] sm:$0x3] }
  0x3d   : > { %577 = vmatpush1.bf16.msra.mxu1 %v993_v13  ;;  %935 = vmatpush3.bf16.msra.mxu0 %v1030_v39  ;;  %v401_v6 = vrot.slane %v396_v5, %v297_v50  ;;  %v405_v7 = vrot.slane %v396_v5, %v301_v52 }
  0x3e   : > { %578 = vmatprep.subr.bf16.mxu1 %v994_v14  ;;  %936 = vmatprep.subr.bf16.mxu0 %v1031_v40 }
  0x41   : > { %579 = vmatpush1.bf16.msra.mxu1 %v996_v15  ;;  %937 = vmatpush3.bf16.msra.mxu0 %v1032_v41 }
  0x42   : > { %580 = vmatprep.subr.bf16.mxu1 %v997_v16  ;;  %938 = vmatprep.subr.bf16.mxu0 %v1033_v42 }
  0x45   : > { %581 = vmatpush1.bf16.msra.mxu1 %v999_v17  ;;  %939 = vmatpush3.bf16.msra.mxu0 %v1034_v43 }
  0x46   : > { %582 = vmatprep.subr.bf16.mxu1 %v1000_v18  ;;  %940 = vmatprep.subr.bf16.mxu0 %v1035_v44 }
  0x49   : > { %583 = vmatpush1.bf16.msra.mxu1 %v1002_v19  ;;  %941 = vmatpush3.bf16.msra.mxu0 %v1036_v45  ;;  %v789_v19 = vand.u32 127, %v295_v48 }
  0x4a   : > { %584 = vmatprep.subr.bf16.mxu1 %v1003_v20  ;;  %942 = vmatprep.subr.bf16.mxu0 %v1037_v46  ;;  %v912_v20 = vld [vmem:[%s1264_s6] ss:$0 sm:$0xff] }
  0x4b   : > { %vm790_vm1 = vcmp.eq.s32.totalorder %v789_v19, 0  ;;  %vm793_vm2 = vcmp.eq.s32.totalorder %v789_v19, 1 }
  0x4d   : > { %585 = vmatpush1.bf16.msra.mxu1 %v1005_v21  ;;  %943 = vmatpush3.bf16.msra.mxu0 %v1038_v47 }
  0x4e   : > { %586 = vmatprep.subr.bf16.mxu1 %v1006_v22  ;;  %944 = vmatprep.subr.bf16.mxu0 %v1039_v1 }
  0x51   : > { %587 = vmatpush1.bf16.msra.mxu1 %v1008_v23  ;;  %945 = vmatpush3.bf16.msra.mxu0 %v1040_v2 }
  0x52   : > { %588 = vmatprep.subr.bf16.mxu1 %v1009_v24  ;;  %946 = vmatprep.subr.bf16.mxu0 %v1041_v3 }
  0x55   : > { %589 = vmatpush1.bf16.msra.mxu1 %v1011_v25  ;;  %947 = vmatpush3.bf16.msra.mxu0 %v1042_v4 }
  0x56   : > { %590 = vmatprep.subr.bf16.mxu1 %v1012_v26 }
  0x59   : > { %591 = vmatpush1.bf16.msra.mxu1 %v1014_v27 }
  0x5a   : > { %592 = vmatprep.subr.bf16.mxu1 %v1015_v28 }
  0x5d   : > { %593 = vmatpush1.bf16.msra.mxu1 %v1017_v29 }
  0x5e   : > { %594 = vmatprep.subr.bf16.mxu1 %v1018_v30 }
  0x61   : > { %595 = vmatpush1.bf16.msra.mxu1 %v1020_v31 }
  0x62   : > { %596 = vmatprep.subr.bf16.mxu1 %v1021_v32 }
  0x65   : > { %597 = vmatpush1.bf16.msra.mxu1 %v1023_v33 }
  0x66   : > { %598 = vmatprep.subr.bf16.mxu1 %v1024_v34 }
  0x69   : > { %599 = vmatpush1.bf16.msra.mxu1 %v1026_v35 }
 0x103   : > { %v353_v55 = vpop.f32.mrb[0].mxu0 }
 0x104   : > { %v354_v56 = vadd.f32 %v353_v55, %v298_v53  ;;  %v355_v57 = vpop.f32.mrb[1].mxu0 }
 0x105   : > { %v356_v58 = vadd.f32 %v355_v57, %v302_v54  ;;  %v357_v59 = vpop.f32.mrb[2].mxu0 }
 0x106   : > { %1043 = vtanh.f32 %v354_v56  ;;  %v358_v60 = vpop.f32.mrb[3].mxu0 }
 0x107   : > { %1045 = vtanh.f32 %v356_v58 }
 0x110   : > { %v1044_v61 = vpop.eup %1043 }
 0x111   : > { %v1046_v62 = vpop.eup %1045  ;;  %v362_v0 = vpack.c.bf16 %v1044_v61, %v1044_v61 }
 0x112   : > { %v363_v63 = vpack.c.bf16 %v1046_v62, %v1046_v62 }
 0x114   : > { %600 = vmatprep.mubr.bf16.mxu1 %v363_v63 }
 0x115   : > { %601 = vmatmul.mubr.bf16.vlgmr.msra.gmra.mrb[0].mxu1 %v362_v0 }
 0x1e8   : > { %v602_v8 = vpop.f32.mrb[0].mxu1 }
 0x1e9   : > { %v603_v9 = vadd.f32 %v602_v8, %v401_v6  ;;  %v604_v10 = vpop.f32.mrb[1].mxu1 }
 0x1ea   : > { %v605_v11 = vadd.f32 %v604_v10, %v405_v7  ;;  %v606_v12 = vpop.f32.mrb[2].mxu1 }
 0x1eb   : > { %v609_v13 = vmax.f32 %v603_v9, 0.0  ;;  %v607_v14 = vpop.f32.mrb[3].mxu1 }
 0x1ec   : > { %v610_v15 = vmax.f32 %v605_v11, 0.0 }
 0x1ed   : > { %v611_v17 = vpack.c.bf16 %v609_v13, %v609_v13 }
 0x1ee   : > { %v612_v16 = vpack.c.bf16 %v610_v15, %v610_v15 }
 0x1f0   : > { %780 = vmatprep.mubr.bf16.mxu0 %v612_v16 }
 0x1f1   : > { %781 = vmatmul.mubr.bf16.vlgmr.msra.gmra.mrb[4].mxu0 %v611_v17 }
 0x2c4   : > { %v948_v18 = vpop.f32.mrb[4].mxu0 }
 0x2c5   : > { %v949_v21 = vpop.f32.mrb[5].mxu0 }
 0x2c6   : > { %v950_v22 = vadd.f32 %v949_v21, %v948_v18  ;;  %v951_v23 = vpop.f32.mrb[6].mxu0 }
 0x2c7   : > { %v952_v24 = vpop.f32.mrb[7].mxu0 }
 0x2c8   : > { %v783_v25 = vadd.f32 %v950_v22, %v912_v20 }
 0x2ca   : > { %v791_v26 = vmax.f32 %v783_v25, 0.0 }
 0x2cc   : > { %v792_v27 = vsel %vm790_vm1, %v791_v26, %v783_v25 }
 0x2cd   : > { %v929_v28 = vmul.f32 -1.442695, %v792_v27 }
 0x2cf   : > { %1047 = vpow2.f32 %v929_v28 }
 0x2d9   : > { %v1048_v29 = vpop.eup %1047 }
 0x2da   : > { %v797_v30 = vadd.f32 1.0, %v1048_v29 }
 0x2dc   : > { %1049 = vrcp.f32 %v797_v30 }
 0x2e6   : > { %v1050_v31 = vpop.eup %1049 }
 0x2e7   : > { %v800_v32 = vsel %vm793_vm2, %v1050_v31, %v792_v27 }
 0x2e8   : > { %802 = vst.msk [vmem:[%s288_s28] sm:$0xff] %vm801_vm3, %v800_v32 }
 0x2e9 PF: > { %s18_s24 = sadd.s32 1, %s1089_s24  }
 0x2ea   : > { %p15_p3 = scmp.ge.s32.totalorder %s18_s24, 4  }
 0x2ec   :  { %17 = sbr.rel (!%p15_p3) target bundleno = 1 (0x1), region = 83 }
 0x2f3   :  { %822 = vsyncpa [#allocation3], 1 }
 0x2f4   :  { %824 = vsyncpa [#allocation3 + $0x1], 1 }

</bundles_post_ra>
